<compile_context>
chip_gen: v6e
topology: v6e:2x2x1
jax: 0.10.0
libtpu: 0.0.40
codegen_flags: <defaults>
</compile_context>

<pallas_src>
import jax
import jax.numpy as jnp
from jax.experimental import pallas as pl
from jax.experimental.pallas import tpu as pltpu


def _cdiv(a: int, b: int) -> int:
    return -(-a // b)


def _vmem_budgets():
    """(pipeline_budget_bytes, vmem_limit_bytes) chosen per TPU generation."""
    try:
        cap = pltpu.get_tpu_info().vmem_capacity_bytes
    except Exception:                       # conservative fallback if the query fails
        cap = 64 * 1024 * 1024
    if cap >= 96 * 1024 * 1024:             # v5e / v6e: 128 MiB physical VMEM
        return 48 * 1024 * 1024, 64 * 1024 * 1024
    # v7x: 64 MiB physical VMEM -> keep the double-buffered footprint well below it.
    return 20 * 1024 * 1024, 30 * 1024 * 1024


def _pick_tile_n(n, c, itemsize, has_alpha, budget_bytes):
    """Largest row tile whose double-buffered pipeline footprint fits the byte budget.

    Counts the logits blocks (2 buffers) plus the lane-padded (tile_n, 1) columns:
    targets (2 buffers), alpha (2 buffers, if present) and the resident output block.
    """
    sub = max(8, 32 // max(1, itemsize))    # sublane packing: f32 -> 8, bf16 -> 16, 8-bit -> 32
    narrow_cols = 3 + (2 if has_alpha else 0)
    bytes_per_row = 2 * c * itemsize + narrow_cols * 128 * 4
    rows = max(sub, budget_bytes // max(1, bytes_per_row))
    rows = (rows // sub) * sub
    if rows >= n:
        return n                            # block == full dim is always a legal block shape
    return rows


def _make_focal_loss_kernel(*, gamma, has_alpha, n_rows, tile_n, steps_per_core, needs_mask):
    gamma = float(gamma)
    gamma_is_small_int = gamma.is_integer() and 1.0 <= gamma <= 8.0

    def kernel(logits_ref, targets_ref, *rest):
        if has_alpha:
            alpha_ref, out_ref = rest
        else:
            out_ref, = rest

        p = pl.program_id(0)                # partial-sum / core axis ("parallel")
        i = pl.program_id(1)                # streaming reduction axis ("arbitrary")

        @pl.when(i == 0)
        def _init():
            out_ref[...] = jnp.zeros_like(out_ref)

        # TODO(synk): on v6e/v7x the (tile_n, C)-wide math could stay in bf16 for bf16
        # inputs (v5e has no bf16 VPU/EUP); kept in f32 to match reference numerics.
        logits = logits_ref[...].astype(jnp.float32)         # (tile_n, C)
        targets = targets_ref[...]                           # (tile_n, 1) int32
        tn, num_classes = logits.shape

        # Stable log-softmax of the target class only (no full softmax / N*C divide).
        m = jnp.max(logits, axis=1, keepdims=True)           # (tile_n, 1)
        shifted = logits - m                                  # (tile_n, C)
        sum_e = jnp.sum(jnp.exp(shifted), axis=1, keepdims=True)

        # One-hot gather via compare + select (no extra full-width multiply).
        class_ids = jax.lax.broadcasted_iota(jnp.int32, (tn, num_classes), 1)
        target_shifted = jnp.sum(
            jnp.where(class_ids == targets, shifted, 0.0), axis=1, keepdims=True)

        log_p = target_shifted - jnp.log(sum_e)               # (tile_n, 1)
        probs = jnp.exp(log_p)
        one_minus_p = 1.0 - probs

        if gamma == 0.0:
            focal = jnp.ones_like(one_minus_p)
        elif gamma == 2.0:
            focal = one_minus_p * one_minus_p
        elif gamma_is_small_int:
            focal = one_minus_p
            for _ in range(int(gamma) - 1):
                focal = focal * one_minus_p
        else:
            focal = jnp.power(one_minus_p, gamma)

        batch_loss = focal * (-log_p)                         # (tile_n, 1)
        if has_alpha:
            batch_loss = alpha_ref[...].astype(jnp.float32) * batch_loss

        if needs_mask:
            # Nominal (unclamped) global row offset of this step; rows >= N contribute 0.
            row0 = (p * steps_per_core + i) * tile_n
            row_ids = row0 + jax.lax.broadcasted_iota(jnp.int32, (tn, 1), 0)
            batch_loss = jnp.where(row_ids < n_rows, batch_loss, 0.0)

        # Vector accumulate into the resident output block (VPU add only; the single
        # cross-sublane reduction is done once, outside the kernel).
        out_ref[...] += batch_loss[None]

    return kernel


def focal_loss(logits, targets, alpha=None, *, gamma=2.0, size_average=True, tile_n=None):
    """Pallas implementation of FocalLoss.forward.

    logits:  (N, C) float32 / bfloat16
    targets: (N,)   integer class ids
    alpha:   None (module default: ones -> fast path) or (C, 1) float, applied per row
             exactly like the reference broadcast (requires N == C).
    Returns a scalar float32 loss.
    """
    N, C = logits.shape
    has_alpha = alpha is not None

    args = [logits, targets.reshape(N, 1).astype(jnp.int32)]
    if has_alpha:
        # Reference broadcast (alpha (C,1) * probs (N,1)) requires N == C; alpha is then
        # applied per row (alpha[i] * loss[i]), matching the PyTorch module.
        assert N == C, "reference broadcast (alpha (C,1) * probs (N,1)) requires N == C"
        args.append(jnp.asarray(alpha, jnp.float32).reshape(N, 1))

    itemsize = jnp.dtype(logits.dtype).itemsize
    pipeline_budget, vmem_limit = _vmem_budgets()
    if tile_n is None:
        tile_n = _pick_tile_n(N, C, itemsize, has_alpha, pipeline_budget)
    else:
        assert tile_n == N or (tile_n % 8 == 0 and 0 < tile_n <= N), \
            "tile_n must equal N or be a positive multiple of 8 that is <= N"

    total_blocks = _cdiv(N, tile_n)
    num_splits = 2 if total_blocks > 1 else 1          # two partial sums -> both v7x TCs
    steps_per_core = _cdiv(total_blocks, num_splits)
    needs_mask = num_splits * steps_per_core * tile_n != N
    needs_clamp = num_splits * steps_per_core != total_blocks
    last_block = total_blocks - 1

    def block_idx(p, i):
        b = p * steps_per_core + i
        if needs_clamp:
            # Fully-out-of-range steps re-fetch the last valid block; their rows are masked.
            b = jnp.minimum(b, last_block)
        return b

    in_specs = [pl.BlockSpec((tile_n, C), lambda p, i: (block_idx(p, i), 0)),
                pl.BlockSpec((tile_n, 1), lambda p, i: (block_idx(p, i), 0))]
    if has_alpha:
        in_specs.append(pl.BlockSpec((tile_n, 1), lambda p, i: (block_idx(p, i), 0)))

    kernel = _make_focal_loss_kernel(
        gamma=float(gamma), has_alpha=has_alpha, n_rows=N, tile_n=tile_n,
        steps_per_core=steps_per_core, needs_mask=needs_mask)

    cost = pl.CostEstimate(
        flops=7 * N * C + 12 * N,
        transcendentals=N * C + 3 * N,
        bytes_accessed=N * C * itemsize + N * 4 * (2 if has_alpha else 1)
        + num_splits * tile_n * 4,
    )

    partials = pl.pallas_call(
        kernel,
        out_shape=jax.ShapeDtypeStruct((num_splits, tile_n, 1), jnp.float32),
        grid=(num_splits, steps_per_core),
        in_specs=in_specs,
        out_specs=pl.BlockSpec((1, tile_n, 1), lambda p, i: (p, 0, 0)),
        compiler_params=pltpu.CompilerParams(
            dimension_semantics=("parallel", "arbitrary"),
            vmem_limit_bytes=vmem_limit,
        ),
        cost_estimate=cost,
    )(*args)

    total = jnp.sum(partials)                 # single cross-lane reduce, outside the kernel
    if size_average:
        total = total / jnp.float32(N)
    return total


def focal_loss_ref(logits, targets, alpha=None, *, gamma=2.0, size_average=True):
    """Pure-JAX reference mirroring the PyTorch module."""
    N, C = logits.shape
    P = jax.nn.softmax(logits.astype(jnp.float32), axis=1)
    class_mask = jax.nn.one_hot(targets, C, dtype=jnp.float32)
    probs = jnp.sum(P * class_mask, axis=1, keepdims=True)            # (N, 1)
    log_p = jnp.log(probs)
    if alpha is None:
        a = jnp.ones((N, 1), jnp.float32)
    else:
        a = jnp.asarray(alpha, jnp.float32).reshape(-1, 1)
    batch_loss = -a * jnp.power(1.0 - probs, gamma) * log_p
    return jnp.mean(batch_loss) if size_average else jnp.sum(batch_loss)


if __name__ == "__main__":
    key = jax.random.PRNGKey(0)
    k1, k2, k3, k4 = jax.random.split(key, 4)

    # class_num == batch size (the reference alpha broadcast requires it).
    N = C = 32
    logits = jax.random.normal(k1, (N, C), dtype=jnp.float32)
    targets = jax.random.randint(k2, (N,), 0, C, dtype=jnp.int32)

    # 1) Module defaults: alpha=None (ones fast path), gamma=2, mean reduction, auto tile.
    out1 = jax.block_until_ready(focal_loss(logits, targets, gamma=2.0, size_average=True))
    ref1 = focal_loss_ref(logits, targets, gamma=2.0, size_average=True)
    assert jnp.allclose(out1, ref1, rtol=1e-5, atol=1e-5), (out1, ref1)

    # 2) Explicit alpha input, sum reduction, tile_n=8 -> grid (2, 2): both partial-sum
    #    slices stream multiple blocks through the resident VMEM accumulator.
    alpha = jnp.ones((C, 1), dtype=jnp.float32)   # FocalLoss.__init__ default
    out2 = jax.block_until_ready(
        focal_loss(logits, targets, alpha, gamma=2.0, size_average=False, tile_n=8))
    ref2 = focal_loss_ref(logits, targets, alpha, gamma=2.0, size_average=False)
    assert jnp.allclose(out2, ref2, rtol=1e-5, atol=1e-5), (out2, ref2)

    # 3) N not divisible by the tile with an odd block count: exercises the masked edge
    #    block, the clamped out-of-range block index, and an integer gamma != 2.
    N3 = C3 = 40
    logits3 = jax.random.normal(k3, (N3, C3), dtype=jnp.float32)
    targets3 = jax.random.randint(k4, (N3,), 0, C3, dtype=jnp.int32)
    out3 = jax.block_until_ready(
        focal_loss(logits3, targets3, gamma=3.0, size_average=True, tile_n=16))
    ref3 = focal_loss_ref(logits3, targets3, gamma=3.0, size_average=True)
    assert jnp.allclose(out3, ref3, rtol=1e-5, atol=1e-5), (out3, ref3)

    print("KERNEL_OK")
</pallas_src>

<mosaic_0001>
module attributes {stable_mosaic.version = 11 : i64} {
  func.func @kernel(%arg0: i32, %arg1: i32, %arg2: memref<32x32xf32, #tpu.memory_space<vmem>>, %arg3: memref<32x1xi32, #tpu.memory_space<vmem>>, %arg4: memref<1x32x1xf32, #tpu.memory_space<vmem>>) attributes {dimension_semantics = [#tpu.dimension_semantics<parallel>, #tpu.dimension_semantics<arbitrary>], iteration_bounds = array<i64: 1, 1>, scalar_prefetch = 0 : i64, scratch_operands = 0 : i64, tpu.core_type = #tpu.core_type<tc>, window_params = [{transform_indices = @transform_0, window_bounds = array<i64: 32, 32>}, {transform_indices = @transform_1, window_bounds = array<i64: 32, 1>}, {transform_indices = @transform_2, window_bounds = array<i64: 1, 32, 1>}]} {
    %c0_i32 = arith.constant 0 : i32
    %0 = arith.cmpi eq, %arg1, %c0_i32 : i32
    %1 = arith.extui %0 : i1 to i32
    %c0_i32_0 = arith.constant 0 : i32
    %2 = arith.cmpi ne, %1, %c0_i32_0 : i32
    scf.if %2 {
      %cst_15 = arith.constant 0.000000e+00 : f32
      %32 = vector.broadcast %cst_15 : f32 to vector<1x32x1xf32>
      %c0_16 = arith.constant 0 : index
      %c0_17 = arith.constant 0 : index
      %c0_18 = arith.constant 0 : index
      %33 = vector.load %arg4[%c0_16, %c0_17, %c0_18] : memref<1x32x1xf32, #tpu.memory_space<vmem>>, vector<1x32x1xf32>
      tpu.vector_store %arg4[%c0_16, %c0_17, %c0_18], %32 {strides = array<i32>} : memref<1x32x1xf32, #tpu.memory_space<vmem>>, vector<1x32x1xf32>,
    } else {
    }
    %c0 = arith.constant 0 : index
    %c0_1 = arith.constant 0 : index
    %3 = vector.load %arg2[%c0, %c0_1] : memref<32x32xf32, #tpu.memory_space<vmem>>, vector<32x32xf32>
    %c0_2 = arith.constant 0 : index
    %c0_3 = arith.constant 0 : index
    %4 = vector.load %arg3[%c0_2, %c0_3] : memref<32x1xi32, #tpu.memory_space<vmem>>, vector<32x1xi32>
    %cst = arith.constant dense<0xFF800000> : vector<32xf32>
    %5 = vector.multi_reduction <maximumf>, %3, %cst [1] : vector<32x32xf32> to vector<32xf32>
    %6 = vector.shape_cast %5 : vector<32xf32> to vector<32x1xf32>
    %7 = vector.broadcast %6 : vector<32x1xf32> to vector<32x32xf32>
    %8 = arith.subf %3, %7 : vector<32x32xf32>
    %9 = math.exp %8 : vector<32x32xf32>
    %cst_4 = arith.constant dense<0.000000e+00> : vector<32xf32>
    %10 = vector.multi_reduction <add>, %9, %cst_4 [1] : vector<32x32xf32> to vector<32xf32>
    %11 = vector.shape_cast %10 : vector<32xf32> to vector<32x1xf32>
    %12 = tpu.iota {dimensions = array<i32: 1>} : vector<32x32xi32>
    %13 = vector.broadcast %4 : vector<32x1xi32> to vector<32x32xi32>
    %14 = arith.cmpi eq, %12, %13 : vector<32x32xi32>
    %cst_5 = arith.constant 0.000000e+00 : f32
    %15 = vector.broadcast %cst_5 : f32 to vector<32x32xf32>
    %16 = arith.select %14, %8, %15 : vector<32x32xi1>, vector<32x32xf32>
    %cst_6 = arith.constant dense<0.000000e+00> : vector<32xf32>
    %17 = vector.multi_reduction <add>, %16, %cst_6 [1] : vector<32x32xf32> to vector<32xf32>
    %18 = vector.shape_cast %17 : vector<32xf32> to vector<32x1xf32>
    %19 = math.log %11 : vector<32x1xf32>
    %20 = arith.subf %18, %19 : vector<32x1xf32>
    %21 = math.exp %20 : vector<32x1xf32>
    %cst_7 = arith.constant 1.000000e+00 : f32
    %22 = vector.broadcast %cst_7 : f32 to vector<32x1xf32>
    %23 = arith.subf %22, %21 : vector<32x1xf32>
    %24 = arith.mulf %23, %23 : vector<32x1xf32>
    %cst_8 = arith.constant 0.000000e+00 : f32
    %25 = vector.broadcast %cst_8 : f32 to vector<32x1xf32>
    %26 = arith.subf %25, %20 : vector<32x1xf32>
    %27 = arith.mulf %24, %26 : vector<32x1xf32>
    %c0_9 = arith.constant 0 : index
    %c0_10 = arith.constant 0 : index
    %c0_11 = arith.constant 0 : index
    %28 = vector.load %arg4[%c0_9, %c0_10, %c0_11] : memref<1x32x1xf32, #tpu.memory_space<vmem>>, vector<1x32x1xf32>
    %29 = vector.shape_cast %27 : vector<32x1xf32> to vector<1x32x1xf32>
    %30 = arith.addf %28, %29 : vector<1x32x1xf32>
    %c0_12 = arith.constant 0 : index
    %c0_13 = arith.constant 0 : index
    %c0_14 = arith.constant 0 : index
    %31 = vector.load %arg4[%c0_12, %c0_13, %c0_14] : memref<1x32x1xf32, #tpu.memory_space<vmem>>, vector<1x32x1xf32>
    tpu.vector_store %arg4[%c0_12, %c0_13, %c0_14], %30 {strides = array<i32>} : memref<1x32x1xf32, #tpu.memory_space<vmem>>, vector<1x32x1xf32>,
    return
  }
  func.func @transform_0(%arg0: i32, %arg1: i32) -> (i32, i32) {
    %c1_i32 = arith.constant 1 : i32
    %0 = arith.muli %arg0, %c1_i32 : i32
    %1 = arith.addi %0, %arg1 : i32
    %c0_i32 = arith.constant 0 : i32
    %c0_i32_0 = arith.constant 0 : i32
    return %1, %c0_i32 : i32, i32
  }
  func.func @transform_1(%arg0: i32, %arg1: i32) -> (i32, i32) {
    %c1_i32 = arith.constant 1 : i32
    %0 = arith.muli %arg0, %c1_i32 : i32
    %1 = arith.addi %0, %arg1 : i32
    %c0_i32 = arith.constant 0 : i32
    %c0_i32_0 = arith.constant 0 : i32
    return %1, %c0_i32 : i32, i32
  }
  func.func @transform_2(%arg0: i32, %arg1: i32) -> (i32, i32, i32) {
    %c0_i32 = arith.constant 0 : i32
    %c0_i32_0 = arith.constant 0 : i32
    %c0_i32_1 = arith.constant 0 : i32
    return %arg0, %c0_i32, %c0_i32_0 : i32, i32, i32
  }
}

</mosaic_0001>

<bundles_post_ra>
// kernel: tpu_custom_call.1
= control target key start
LH: loop header
LB: loop body
LE: loop exit
PB: predicated region body
PF: predicated region fallthrough
CT: control target
= control target key end

     0   :  { %vm72_vm0 = vcmask 261120   ;;  %v236_v3 = vmov 0   ;;  %v109_v26 = vlaneseq  ;;  %vm59_vm5 = vcmask 7168   ;;  %s333_s0 = inlined_call_operand.vmem [shape: f32[32,32], index: 0, kind: input, shape index: {}]   ;;  %s334_s1 = inlined_call_operand.vmem [shape: s32[32,1], index: 1, kind: input, shape index: {}]   ;;  %s335_s2 = inlined_call_operand.vmem [shape: f32[1,32,1], index: 2, kind: output, shape index: {}]  }
   0x1   :  { %v66_v0 = vld [vmem:[%s333_s0 + $0x10] sm:$0xff]  ;;  %v64_v1 = vld [vmem:[%s333_s0] sm:$0xff]  ;;  %v67_v2 = vld [vmem:[%s333_s0 + $0x18] sm:$0xff]  ;;  %211 = vset.pattern.permute.xlu1 %v236_v3  ;;  %210 = vset.pattern.permute.xlu0 %v236_v3  ;;  %v237_v47 = vmov 0.0  }
   0x2   :  { %v79_v4 = vsel %vm72_vm0, %v66_v0, -inf  ;;  %v73_v5 = vsel %vm72_vm0, %v64_v1, -inf  ;;  %v65_v6 = vld [vmem:[%s333_s0 + $0x8] sm:$0xff]  ;;  %v82_v7 = vsel %vm72_vm0, %v67_v2, -inf  ;;  %v70_v10 = vld [vmem:[%s334_s1 + $0x10] sm:$0xff]  ;;  %v68_v11 = vld [vmem:[%s334_s1] sm:$0xff] }
   0x3   :  { %80 = vmax.xlane.f32.xlu1 %v79_v4  ;;  %74 = vmax.xlane.f32.xlu0 %v73_v5  ;;  %v76_v8 = vsel %vm72_vm0, %v65_v6, -inf  ;;  %v69_v9 = vld [vmem:[%s334_s1 + $0x8] sm:$0xff]  ;;  %v71_v12 = vld [vmem:[%s334_s1 + $0x18] sm:$0xff]  ;;  %v110_v30 = vand.u32 127, %v109_v26  ;;  %62 = vst.msk [vmem:[%s335_s2 + $0x10] sm:$0xff] %vm59_vm5, %v237_v47  ;;  %60 = vst.msk [vmem:[%s335_s2] sm:$0xff] %vm59_vm5, %v237_v47 }
   0x4   :  { %61 = vst.msk [vmem:[%s335_s2 + $0x8] sm:$0xff] %vm59_vm5, %v237_v47  ;;  %63 = vst.msk [vmem:[%s335_s2 + $0x18] sm:$0xff] %vm59_vm5, %v237_v47 }
   0x7   :  { %83 = vmax.xlane.f32.xlu1 %v82_v7  ;;  %77 = vmax.xlane.f32.xlu0 %v76_v8 }
   0xb   :  { %v180_v26 = vld [vmem:[%s335_s2 + $0x8] sm:$0xff] }
  0x18   :  { %115 = vperm.xlu1 %211, %v69_v9  }
  0x1c   :  { %118 = vperm.xlu1 %211, %v70_v10  }
  0x1d   :  { %112 = vperm.xlu0 %210, %v68_v11  }
  0x20   :  { %121 = vperm.xlu1 %211, %v71_v12  }
  0x8c   :  { %v81_v13 = vpop.xlane.xlu1 %80  ;;  %v75_v14 = vpop.xlane.xlu0 %74 }
  0x8d   :  { %v87_v15 = vsub.f32 %v66_v0, %v81_v13  ;;  %v85_v16 = vsub.f32 %v64_v1, %v75_v14  ;;  %v179_v13 = vld [vmem:[%s335_s2] sm:$0xff] }
  0x8f   :  { %v93_v17 = vmul.f32 1.442695, %v87_v15  ;;  %v89_v18 = vmul.f32 1.442695, %v85_v16 }
  0x90   :  { %v84_v19 = vpop.xlane.xlu1 %83  ;;  %v78_v20 = vpop.xlane.xlu0 %77 }
  0x91   :  { %212 = vpow2.f32 %v93_v17  ;;  %v88_v21 = vsub.f32 %v67_v2, %v84_v19  ;;  %v86_v22 = vsub.f32 %v65_v6, %v78_v20 }
  0x92   :  { %214 = vpow2.f32 %v89_v18 }
  0x93   :  { %v95_v23 = vmul.f32 1.442695, %v88_v21  ;;  %v91_v24 = vmul.f32 1.442695, %v86_v22 }
  0x94   :  { %v116_v25 = vpop.permute.xlu1 %115 }
  0x95   :  { %216 = vpow2.f32 %v95_v23  ;;  %vm124_vm3 = vcmp.eq.s32.totalorder %v110_v30, %v116_v25 }
  0x96   :  { %218 = vpow2.f32 %v91_v24  ;;  %v128_v43 = vsel %vm124_vm3, %v86_v22, 0.0  ;;  %v181_v22 = vld [vmem:[%s335_s2 + $0x10] sm:$0xff] }
  0x97   :  { %v134_v44 = vsel %vm72_vm0, %v128_v43, 0.0 }
  0x98   :  { %v119_v29 = vpop.permute.xlu1 %118  ;;  %v113_v35 = vpop.permute.xlu0 %112 }
  0x99   :  { %vm125_vm1 = vcmp.eq.s32.totalorder %v110_v30, %v119_v29  ;;  %vm123_vm2 = vcmp.eq.s32.totalorder %v110_v30, %v113_v35 }
  0x9a   :  { %v129_v37 = vsel %vm125_vm1, %v87_v15, 0.0  ;;  %v127_v40 = vsel %vm123_vm2, %v85_v16, 0.0 }
  0x9b   :  { %v137_v39 = vsel %vm72_vm0, %v129_v37, 0.0  ;;  %v131_v42 = vsel %vm72_vm0, %v127_v40, 0.0 }
  0x9c   :  { %v122_v41 = vpop.permute.xlu1 %121 }
  0x9d   :  { %vm126_vm4 = vcmp.eq.s32.totalorder %v110_v30, %v122_v41 }
  0x9e   :  { %v213_v27 = vpop.eup %212  ;;  %v130_v45 = vsel %vm126_vm4, %v88_v21, 0.0 }
  0x9f   :  { %v215_v28 = vpop.eup %214  ;;  %v103_v33 = vsel %vm72_vm0, %v213_v27, 0.0  ;;  %v140_v46 = vsel %vm72_vm0, %v130_v45, 0.0 }
  0xa0   :  { %v97_v31 = vsel %vm72_vm0, %v215_v28, 0.0 }
  0xa1   :  { %98 = vadd.xlane.f32.xlu1 %v97_v31 }
  0xa2   :  { %v217_v32 = vpop.eup %216 }
  0xa3   :  { %v219_v34 = vpop.eup %218  ;;  %v106_v38 = vsel %vm72_vm0, %v217_v32, 0.0 }
  0xa4   :  { %v100_v36 = vsel %vm72_vm0, %v219_v34, 0.0 }
  0xa5   :  { %104 = vadd.xlane.f32.xlu1 %v103_v33  ;;  %101 = vadd.xlane.f32.xlu0 %v100_v36  ;;  %v182_v33 = vld [vmem:[%s335_s2 + $0x18] sm:$0xff] }
  0xa9   :  { %107 = vadd.xlane.f32.xlu1 %v106_v38  ;;  %138 = vadd.xlane.f32.xlu0 %v137_v39 }
  0xad   :  { %132 = vadd.xlane.f32.xlu1 %v131_v42 }
  0xb1   :  { %135 = vadd.xlane.f32.xlu1 %v134_v44 }
  0xb5   :  { %141 = vadd.xlane.f32.xlu1 %v140_v46 }
 0x12a   :  { %v99_v48 = vpop.xlane.xlu1 %98 }
 0x12b   :  { %220 = vlog2.f32 %v99_v48 }
 0x12e   :  { %v105_v49 = vpop.xlane.xlu1 %104  ;;  %v102_v50 = vpop.xlane.xlu0 %101 }
 0x12f   :  { %222 = vlog2.f32 %v105_v49 }
 0x130   :  { %224 = vlog2.f32 %v102_v50 }
 0x132   :  { %v108_v51 = vpop.xlane.xlu1 %107  ;;  %v139_v61 = vpop.xlane.xlu0 %138 }
 0x133   :  { %226 = vlog2.f32 %v108_v51 }
 0x136   :  { %v133_v52 = vpop.xlane.xlu1 %132 }
 0x138   :  { %v221_v53 = vpop.eup %220 }
 0x139   :  { %v144_v54 = vmul.f32 0.6931472, %v221_v53 }
 0x13a   :  { %v136_v57 = vpop.xlane.xlu1 %135 }
 0x13b   :  { %v151_v55 = vsub.f32 %v133_v52, %v144_v54 }
 0x13c   :  { %v223_v56 = vpop.eup %222 }
 0x13d   :  { %v225_v58 = vpop.eup %224  ;;  %v148_v59 = vmul.f32 0.6931472, %v223_v56  ;;  %v155_v60 = vmul.f32 1.442695, %v151_v55  ;;  %v171_v11 = vsub.f32 0.0, %v151_v55 }
 0x13e   :  { %v146_v62 = vmul.f32 0.6931472, %v225_v58  ;;  %v142_v5 = vpop.xlane.xlu1 %141 }
 0x13f   :  { %v153_v63 = vsub.f32 %v139_v61, %v148_v59  ;;  %228 = vpow2.f32 %v155_v60 }
 0x140   :  { %v227_v0 = vpop.eup %226  ;;  %v152_v1 = vsub.f32 %v136_v57, %v146_v62 }
 0x141   :  { %v159_v2 = vmul.f32 1.442695, %v153_v63  ;;  %v150_v3 = vmul.f32 0.6931472, %v227_v0  ;;  %v173_v19 = vsub.f32 0.0, %v153_v63 }
 0x142   :  { %v157_v4 = vmul.f32 1.442695, %v152_v1  ;;  %v172_v24 = vsub.f32 0.0, %v152_v1 }
 0x143   :  { %230 = vpow2.f32 %v159_v2  ;;  %v154_v6 = vsub.f32 %v142_v5, %v150_v3 }
 0x144   :  { %232 = vpow2.f32 %v157_v4 }
 0x145   :  { %v161_v7 = vmul.f32 1.442695, %v154_v6  ;;  %v174_v31 = vsub.f32 0.0, %v154_v6 }
 0x147   :  { %234 = vpow2.f32 %v161_v7 }
 0x14c   :  { %v229_v8 = vpop.eup %228 }
 0x14d   :  { %v163_v9 = vsub.f32 1.0, %v229_v8 }
 0x14f   :  { %v167_v10 = vmul.f32 %v163_v9, %v163_v9 }
 0x150   :  { %v231_v12 = vpop.eup %230 }
 0x151   :  { %v233_v14 = vpop.eup %232  ;;  %v165_v15 = vsub.f32 1.0, %v231_v12  ;;  %v175_v16 = vmul.f32 %v171_v11, %v167_v10 }
 0x152   :  { %v164_v17 = vsub.f32 1.0, %v233_v14 }
 0x153   :  { %v169_v18 = vmul.f32 %v165_v15, %v165_v15  ;;  %v183_v20 = vadd.f32 %v179_v13, %v175_v16 }
 0x154   :  { %v235_v21 = vpop.eup %234  ;;  %v168_v23 = vmul.f32 %v164_v17, %v164_v17 }
 0x155   :  { %v177_v25 = vmul.f32 %v173_v19, %v169_v18  ;;  %188 = vst.msk [vmem:[%s335_s2] sm:$0xff] %vm59_vm5, %v183_v20  ;;  %v166_v27 = vsub.f32 1.0, %v235_v21 }
 0x156   :  { %v176_v28 = vmul.f32 %v172_v24, %v168_v23 }
 0x157   :  { %v185_v29 = vadd.f32 %v181_v22, %v177_v25  ;;  %v170_v30 = vmul.f32 %v166_v27, %v166_v27 }
 0x158   :  { %v184_v32 = vadd.f32 %v180_v26, %v176_v28 }
 0x159   :  { %190 = vst.msk [vmem:[%s335_s2 + $0x10] sm:$0xff] %vm59_vm5, %v185_v29  ;;  %v178_v34 = vmul.f32 %v174_v31, %v170_v30 }
 0x15a   :  { %189 = vst.msk [vmem:[%s335_s2 + $0x8] sm:$0xff] %vm59_vm5, %v184_v32 }
 0x15b   :  { %v186_v35 = vadd.f32 %v182_v33, %v178_v34 }
 0x15d   :  { %191 = vst.msk [vmem:[%s335_s2 + $0x18] sm:$0xff] %vm59_vm5, %v186_v35 }

</bundles_post_ra>
